<compile_context>
chip_gen: v6e
topology: v6e:2x2x1
jax: 0.10.0
libtpu: 0.0.40
codegen_flags: <defaults>
</compile_context>

<pallas_src>
import jax
import jax.numpy as jnp
from jax.experimental import pallas as pl
from jax.experimental.pallas import tpu as pltpu

BETA = 1.0
THRESHOLD = 20.0
OFFSET = 1.0 + 1e-06

_LANE = 128
_COL_CANDIDATES = (4096, 2048, 1024, 512, 256, 128)
_TARGET_TILE_BYTES = 8 * 1024 * 1024          # ~8 MiB per tile
_VMEM_LIMIT_BYTES = 48 * 1024 * 1024          # 4x tile (dbl-buffered in+out) + headroom
_RAGGED_TILE_ELEMS = 128 * 1024               # lane-tile for the rare ragged path
_SUBLANE_FOR_ITEMSIZE = {4: 8, 2: 16, 1: 32}  # packed sublane multiple per dtype width


def _softplus_offset_kernel(x_ref, o_ref):
    xf = x_ref[...].astype(jnp.float32)
    # BETA == 1.0 is folded at trace time (Python-level guard, no vmul/div).
    bx = xf if BETA == 1.0 else BETA * xf
    # Clamp before exp so it never overflows; the threshold select reproduces
    # PyTorch's Softplus linear regime exactly.
    sp = jnp.log1p(jnp.exp(jnp.minimum(bx, THRESHOLD)))
    if BETA != 1.0:
        sp = sp * (1.0 / BETA)
    y = jnp.where(bx > THRESHOLD, xf, sp) + OFFSET
    o_ref[...] = y.astype(o_ref.dtype)


def _cost_estimate(n_elems, itemsize):
    return pl.CostEstimate(
        flops=4 * int(n_elems),
        transcendentals=2 * int(n_elems),
        bytes_accessed=2 * int(n_elems) * int(itemsize),
    )


def _round_up(x, m):
    return ((x + m - 1) // m) * m


def _pick_cols(n):
    # Widest lane-dense slab that divides n; rows need not be a multiple of 8
    # (cdiv grid + ragged-row blocks handle that).
    for cols in _COL_CANDIDATES:
        if n % cols == 0:
            return cols
    return _LANE  # unreachable when n % 128 == 0


def _run_2d(x2d):
    rows, cols = x2d.shape
    itemsize = jnp.dtype(x2d.dtype).itemsize
    sub = _SUBLANE_FOR_ITEMSIZE.get(itemsize, 8)

    # ~8 MiB tile, rows rounded to the packed sublane multiple.
    tm = max(sub, (_TARGET_TILE_BYTES // (cols * itemsize)) // sub * sub)
    if rows > sub:
        # Guarantee >= 2 grid steps so the parallel axis splits across v7x's
        # two TensorCores (no effect on v5e/v6e).
        tm = min(tm, _round_up(pl.cdiv(rows, 2), sub))
    else:
        tm = rows  # tiny input: single full-dim block

    grid = (pl.cdiv(rows, tm),)
    return pl.pallas_call(
        _softplus_offset_kernel,
        out_shape=jax.ShapeDtypeStruct((rows, cols), x2d.dtype),
        grid_spec=pltpu.PrefetchScalarGridSpec(
            num_scalar_prefetch=0,
            grid=grid,
            in_specs=[pl.BlockSpec((tm, cols), lambda i: (i, 0))],
            out_specs=pl.BlockSpec((tm, cols), lambda i: (i, 0)),
        ),
        compiler_params=pltpu.CompilerParams(
            dimension_semantics=("parallel",),
            vmem_limit_bytes=_VMEM_LIMIT_BYTES),
        cost_estimate=_cost_estimate(rows * cols, itemsize),
    )(x2d)


def _run_ragged(flat):
    # Rare path: n not divisible by 128.  Present the flat buffer as (1, n)
    # and tile along lanes; the cdiv grid lets Pallas mask the ragged tail,
    # avoiding the pad + slice HBM passes of the previous version.
    n = flat.shape[0]
    itemsize = jnp.dtype(flat.dtype).itemsize
    x2d = flat.reshape(1, n)
    tn = n if n <= _RAGGED_TILE_ELEMS else _RAGGED_TILE_ELEMS  # cap is %128
    grid = (pl.cdiv(n, tn),)
    out = pl.pallas_call(
        _softplus_offset_kernel,
        out_shape=jax.ShapeDtypeStruct((1, n), flat.dtype),
        grid_spec=pltpu.PrefetchScalarGridSpec(
            num_scalar_prefetch=0,
            grid=grid,
            in_specs=[pl.BlockSpec((1, tn), lambda j: (0, j))],
            out_specs=pl.BlockSpec((1, tn), lambda j: (0, j)),
        ),
        compiler_params=pltpu.CompilerParams(
            dimension_semantics=("parallel",),
            vmem_limit_bytes=_VMEM_LIMIT_BYTES),
        cost_estimate=_cost_estimate(n, itemsize),
    )(x2d)
    return out.reshape(n)


def softplus_with_offset(x):
    orig_shape = x.shape
    n = x.size
    if n == 0:
        return x

    if n % _LANE == 0:
        # Fast path: contiguous reshape only (free), lane-dense 2D slab.
        cols = _pick_cols(n)
        rows = n // cols
        out2d = _run_2d(x.reshape(rows, cols))
        return out2d.reshape(orig_shape)

    # Ragged path (shapes not divisible by 128).
    return _run_ragged(x.reshape(-1)).reshape(orig_shape)


def _reference(x):
    xf = x.astype(jnp.float32)
    bx = BETA * xf
    sp = jnp.where(bx > THRESHOLD, xf,
                   jnp.log1p(jnp.exp(jnp.minimum(bx, THRESHOLD))) / BETA)
    return (sp + OFFSET).astype(x.dtype)


if __name__ == "__main__":
    key = jax.random.PRNGKey(0)
    k1, k2, k3 = jax.random.split(key, 3)

    # Fast path: NCHW-like input (2*4*16*16 = 2048 elements), scaled so some
    # values exceed the threshold (linear) regime.
    x = jax.random.normal(k1, (2, 4, 16, 16), dtype=jnp.float32) * 15.0
    y = jax.block_until_ready(softplus_with_offset(x))
    y_ref = _reference(x)
    assert y.shape == x.shape and y.dtype == x.dtype
    assert jnp.allclose(y, y_ref, atol=1e-5, rtol=1e-5)

    # Fast path with multiple row-blocks (exercises tm capping / grid >= 2).
    x1 = jax.random.normal(k2, (2, 4, 64, 128), dtype=jnp.float32) * 15.0
    y1 = jax.block_until_ready(softplus_with_offset(x1))
    assert y1.shape == x1.shape and y1.dtype == x1.dtype
    assert jnp.allclose(y1, _reference(x1), atol=1e-5, rtol=1e-5)

    # Ragged path: shape not divisible by 128.
    x2 = jax.random.normal(k3, (3, 5, 7), dtype=jnp.float32) * 15.0
    y2 = jax.block_until_ready(softplus_with_offset(x2))
    assert y2.shape == x2.shape and y2.dtype == x2.dtype
    assert jnp.allclose(y2, _reference(x2), atol=1e-5, rtol=1e-5)

    print("KERNEL_OK")
</pallas_src>

<mosaic_0001>
module attributes {stable_mosaic.version = 11 : i64} {
  func.func @_softplus_offset_kernel(%arg0: i32, %arg1: memref<1x2048xf32, #tpu.memory_space<vmem>>, %arg2: memref<1x2048xf32, #tpu.memory_space<vmem>>) attributes {dimension_semantics = [#tpu.dimension_semantics<parallel>], iteration_bounds = array<i64: 1>, scalar_prefetch = 0 : i64, scratch_operands = 0 : i64, tpu.core_type = #tpu.core_type<tc>, window_params = [{transform_indices = @transform_0, window_bounds = array<i64: 1, 2048>}, {transform_indices = @transform_1, window_bounds = array<i64: 1, 2048>}]} {
    %c0 = arith.constant 0 : index
    %c0_0 = arith.constant 0 : index
    %0 = vector.load %arg1[%c0, %c0_0] : memref<1x2048xf32, #tpu.memory_space<vmem>>, vector<1x2048xf32>
    %cst = arith.constant 2.000000e+01 : f32
    %1 = vector.broadcast %cst : f32 to vector<1x2048xf32>
    %2 = arith.minimumf %0, %1 : vector<1x2048xf32>
    %3 = math.exp %2 : vector<1x2048xf32>
    %4 = math.log1p %3 : vector<1x2048xf32>
    %cst_1 = arith.constant 2.000000e+01 : f32
    %5 = vector.broadcast %cst_1 : f32 to vector<1x2048xf32>
    %6 = arith.cmpf ogt, %0, %5 : vector<1x2048xf32>
    %7 = arith.select %6, %0, %4 : vector<1x2048xi1>, vector<1x2048xf32>
    %cst_2 = arith.constant 1.00000095 : f32
    %8 = vector.broadcast %cst_2 : f32 to vector<1x2048xf32>
    %9 = arith.addf %7, %8 : vector<1x2048xf32>
    %c0_3 = arith.constant 0 : index
    %c0_4 = arith.constant 0 : index
    %10 = vector.load %arg2[%c0_3, %c0_4] : memref<1x2048xf32, #tpu.memory_space<vmem>>, vector<1x2048xf32>
    tpu.vector_store %arg2[%c0_3, %c0_4], %9 {strides = array<i32>} : memref<1x2048xf32, #tpu.memory_space<vmem>>, vector<1x2048xf32>,
    return
  }
  func.func @transform_0(%arg0: i32) -> (i32, i32) {
    %c0_i32 = arith.constant 0 : i32
    %c0_i32_0 = arith.constant 0 : i32
    return %arg0, %c0_i32 : i32, i32
  }
  func.func @transform_1(%arg0: i32) -> (i32, i32) {
    %c0_i32 = arith.constant 0 : i32
    %c0_i32_0 = arith.constant 0 : i32
    return %arg0, %c0_i32 : i32, i32
  }
}

</mosaic_0001>

<bundles_post_ra>
// kernel: tpu_custom_call.1
= control target key start
LH: loop header
LB: loop body
LE: loop exit
PB: predicated region body
PF: predicated region fallthrough
CT: control target
= control target key end

     0   :  { %6 = vsyncpa [#allocation3], 0  ;;  %s142_s0 = inlined_call_operand.hbm [shape: f32[1,2048], index: 0, kind: input, shape index: {}]   ;;  %s143_s1 = inlined_call_operand.hbm [shape: f32[1,2048], index: 1, kind: output, shape index: {}]  }
   0x1   :  { %7 = vsyncpa [#allocation4], 0  ;;  %s124_s6 = smov [#allocation2]  }
   0x2   :  { %s14_s7 = sshll.u32 %s124_s6, 4  ;;  %s15_s7 = int_to_ptr.vmem [resolvable:$true] %s14_s7 }
   0x3   :  { %s88_s8 = scalar_lea.vmem %s15_s7, 256  ;;  %p93_p1 = scmp.lt.s32.totalorder %s15_s7, %s15_s7 }
   0x4   :  { %p89_p0 = scmp.ne.s32.totalorder %s15_s7, %s88_s8  ;;  %p94_p2 = scmp.lt.s32.totalorder %s88_s8, %s88_s8 }
   0x6   :  { %p95_p3 = por %p94_p2, %p93_p1 }
   0x8   :  { %p96_p4 = pnand %p95_p3, %p89_p0 }
   0xa   :  { %99 = shalt.err (!%p96_p4)
}
   0xb   :  { %17 = dma.hbm_to_vmem [thread:$0]  %s142_s0, 256, %s15_s7, [#allocation3]  }
   0xc   :  { %120 = dma.done.wait [#allocation3], 256  }
   0xd   :  { %121 = vsyncadd [#allocation3], 4294967040  ;;  %v21_v0 = vld [vmem:[#allocation2] sm:$0xff]  ;;  %v22_v1 = vld [vmem:[#allocation2 + $0x8] sm:$0xff]  ;;  %s125_s0 = smov [#allocation5]  }
   0xe   :  { %v23_v2 = vmin.f32 %v21_v0, 20.0  ;;  %v24_v3 = vmin.f32 %v22_v1, 20.0  ;;  %vm47_vm1 = vcmp.gt.f32.partialorder %v21_v0, 20.0  ;;  %vm48_vm3 = vcmp.gt.f32.partialorder %v22_v1, 20.0  ;;  %s61_s11 = sshll.u32 %s125_s0, 4  ;;  %s62_s11 = int_to_ptr.vmem [resolvable:$true] %s61_s11 }
   0xf   :  { %s100_s12 = scalar_lea.vmem %s62_s11, 256  ;;  %p105_p6 = scmp.lt.s32.totalorder %s62_s11, %s62_s11 }
  0x10   :  { %v25_v4 = vmul.f32 1.442695, %v23_v2  ;;  %v27_v5 = vmul.f32 1.442695, %v24_v3  ;;  %p101_p5 = scmp.ne.s32.totalorder %s62_s11, %s100_s12  ;;  %p106_p7 = scmp.lt.s32.totalorder %s100_s12, %s100_s12 }
  0x12   :  { %72 = vpow2.f32 %v25_v4  ;;  %p107_p8 = por %p106_p7, %p105_p6 }
  0x13   :  { %74 = vpow2.f32 %v27_v5 }
  0x14   :  { %p108_p9 = pnand %p107_p8, %p101_p5 }
  0x1f   :  { %v73_v6 = vpop.eup %72 }
  0x20   :  { %v75_v7 = vpop.eup %74  ;;  %v29_v8 = vadd.f32 1.0, %v73_v6  ;;  %v32_v10 = vmul.f32 -0.5, %v73_v6  ;;  %v35_v13 = vand.u32 2147483647, %v73_v6 }
  0x21   :  { %v38_v9 = vadd.f32 1.0, %v75_v7  ;;  %v41_v11 = vmul.f32 -0.5, %v75_v7  ;;  %v44_v15 = vand.u32 2147483647, %v75_v7 }
  0x22   :  { %76 = vlog2.f32 %v29_v8  ;;  %v33_v12 = vadd.f32 1.0, %v32_v10  ;;  %vm36_vm0 = vcmp.lt.f32.partialorder %v35_v13, 0.0004427343 }
  0x23   :  { %78 = vlog2.f32 %v38_v9  ;;  %v42_v14 = vadd.f32 1.0, %v41_v11  ;;  %vm45_vm2 = vcmp.lt.f32.partialorder %v44_v15, 0.0004427343 }
  0x24   :  { %v34_v16 = vmul.f32 %v73_v6, %v33_v12 }
  0x25   :  { %v43_v18 = vmul.f32 %v75_v7, %v42_v14 }
  0x2f   :  { %v77_v17 = vpop.eup %76 }
  0x30   :  { %v79_v19 = vpop.eup %78  ;;  %v31_v20 = vmul.f32 0.6931472, %v77_v17 }
  0x31   :  { %v40_v21 = vmul.f32 0.6931472, %v79_v19 }
  0x32   :  { %v37_v22 = vsel %vm36_vm0, %v34_v16, %v31_v20 }
  0x33   :  { %v49_v23 = vsel %vm47_vm1, %v21_v0, %v37_v22  ;;  %v46_v24 = vsel %vm45_vm2, %v43_v18, %v40_v21 }
  0x34   :  { %v51_v25 = vadd.f32 1.000001, %v49_v23  ;;  %v50_v26 = vsel %vm48_vm3, %v22_v1, %v46_v24 }
  0x35   :  { %v52_v27 = vadd.f32 1.000001, %v50_v26 }
  0x36   :  { %53 = vst [vmem:[#allocation5] sm:$0xff] %v51_v25 }
  0x37   :  { %54 = vst [vmem:[#allocation5 + $0x8] sm:$0xff] %v52_v27 }
  0x38   :  { %111 = shalt.err (!%p108_p9)
}
  0x39   :  { %64 = dma.vmem_to_hbm [thread:$0]  %s62_s11, 256, %s143_s1, [#allocation4]  }
  0x3a   :  { %122 = dma.done.wait [#allocation4], 256  }
  0x3b   :  { %123 = vsyncadd [#allocation4], 4294967040 }
  0x3c   :  { %68 = vsyncpa [#allocation3], 1 }
  0x3d   :  { %69 = vsyncpa [#allocation4], 1 }

</bundles_post_ra>
